<compile_context>
chip_gen: v7x
topology: tpu7x:2x2x1
jax: 0.10.0
libtpu: 0.0.40
codegen_flags: <defaults>
</compile_context>

<pallas_src>
import numpy as np
import jax
import jax.numpy as jnp
from jax import lax
from jax.experimental import pallas as pl
from jax.experimental.pallas import tpu as pltpu

_LANE = 128


def _round_up(x, m):
    return ((x + m - 1) // m) * m


def _vmem_capacity_bytes():
    """Physical VMEM per TensorCore; conservative 64 MiB (v7x) if unknown."""
    try:
        return int(pltpu.get_tpu_info().vmem_capacity_bytes)
    except Exception:
        return 64 * 1024 * 1024


def _default_num_k_splits():
    """Split the K reduction across both TensorCores on v7x, else 1."""
    try:
        kind = jax.devices()[0].device_kind.lower()
        return 2 if "v7" in kind else 1
    except Exception:
        return 1


def _plan(M, K, n_splits, bpe, mask_rows, expand_cols, tk):
    """Derive (tk, n_splits, blocks_per_split, K_pad, vmem_limit) from VMEM."""
    cap = _vmem_capacity_bytes()
    budget = int(cap * 0.75)               # leave slack for compiler scratch
    headroom = 4 << 20
    out_bytes = 2 * 2 * M * M * 4          # 2 Gram accumulators x 2 buffers, f32
    e_bytes = 2 * M * expand_cols * bpe if expand_cols else 0
    stream_rows = 2 * M + mask_rows        # pred + target + (compact|full) mask
    per_128 = 2 * stream_rows * _LANE * bpe  # 2 pipeline buffers per input
    avail = budget - out_bytes - e_bytes - headroom

    if tk is None:
        if avail < per_128:
            # TODO(synk): M-tiled fallback (write Gram row-panels to HBM)
            # instead of failing for very large n*c.
            raise ValueError(
                f"GramLoss: the ({M},{M}) f32 Gram accumulators "
                f"(~{out_bytes / 2**20:.1f} MiB double-buffered) leave no room "
                f"for a 128-wide input tile within ~{budget / 2**20:.0f} MiB of "
                f"VMEM on this device.")
        tk = (avail // per_128) * _LANE
        tk = max(_LANE, min(tk, _round_up(K, _LANE), 1 << 16))
    if tk % _LANE != 0:
        raise ValueError(f"tk={tk} must be a multiple of {_LANE}")

    nbk_total = -(-K // tk)                       # ceil(K / tk)
    n_splits = max(1, min(n_splits, nbk_total))   # never split below 1 tile/core
    nbk_total = _round_up(nbk_total, n_splits)
    k_pad = nbk_total * tk
    nbk = nbk_total // n_splits

    in_bytes = 2 * stream_rows * tk * bpe
    vmem_limit = out_bytes + e_bytes + in_bytes + headroom
    vmem_limit = int(min(max(vmem_limit, 32 << 20), int(cap * 0.9)))
    return tk, n_splits, nbk, k_pad, vmem_limit


def _prepare_mask(mask, pred_shape, dtype):
    """Return (mask_2d, expand) — expand is a (M, R) one-hot matrix or None."""
    n, c, h, w = pred_shape
    M, K = n * c, h * w
    mask = mask.astype(dtype)
    if mask.shape == pred_shape:
        return mask.reshape(M, K), None        # plain reshape, no HBM broadcast

    if (mask.ndim == 4 and mask.shape[2:] == (h, w)
            and mask.shape[0] in (1, n) and mask.shape[1] in (1, c)):
        mn, mc = mask.shape[:2]
        R = mn * mc
        mask_rows = mask.reshape(R, K)
        rows = np.arange(M)
        s_idx, ch_idx = rows // c, rows % c
        mrow = ((s_idx if mn == n else np.zeros_like(s_idx)) * mc
                + (ch_idx if mc == c else np.zeros_like(ch_idx)))
        expand_np = np.zeros((M, R), dtype=np.float32)
        expand_np[np.arange(M), mrow] = 1.0
        return mask_rows, jnp.asarray(expand_np, dtype=dtype)

    # TODO(synk): other broadcast patterns (e.g. spatial-1 masks) fall back to
    # a full HBM materialization.
    return jnp.broadcast_to(mask, pred_shape).astype(dtype).reshape(M, K), None


def _make_gram_kernel(compact_mask, precision):
    dn_gram = (((1,), (1,)), ((), ()))     # contract last dims -> (M, M), no .T
    dn_expand = (((1,), (0,)), ((), ()))   # (M, R) @ (R, tk) -> (M, tk)

    def _body(pred_ref, target_ref, m, p_out, q_out, k):
        p = pred_ref[...] * m              # VPU masking
        q = target_ref[...] * m
        p_new = lax.dot_general(p, p, dimension_numbers=dn_gram,
                                precision=precision,
                                preferred_element_type=jnp.float32)
        q_new = lax.dot_general(q, q, dimension_numbers=dn_gram,
                                precision=precision,
                                preferred_element_type=jnp.float32)

        @pl.when(k == 0)
        def _():                           # direct assign: no zero-fill + RMW
            p_out[...] = p_new
            q_out[...] = q_new

        @pl.when(k > 0)
        def _():
            p_out[...] += p_new
            q_out[...] += q_new

    if compact_mask:
        def kernel(pred_ref, target_ref, mask_ref, expand_ref, p_out, q_out):
            k = pl.program_id(1)
            # Expand the compact (R, tk) mask block to (M, tk) on the MXU.
            m = lax.dot_general(expand_ref[...], mask_ref[...],
                                dimension_numbers=dn_expand,
                                precision=lax.Precision.HIGHEST,
                                preferred_element_type=jnp.float32
                                ).astype(pred_ref.dtype)
            _body(pred_ref, target_ref, m, p_out, q_out, k)
    else:
        def kernel(pred_ref, target_ref, mask_ref, p_out, q_out):
            k = pl.program_id(1)
            _body(pred_ref, target_ref, mask_ref[...], p_out, q_out, k)

    return kernel


def gram_loss(pred, target, mask, *, tk=None, num_k_splits=None,
              compute_dtype=None, precision=lax.Precision.HIGHEST):
    """Scalar L1 Gram loss, matching PyTorch GramLoss.forward.

    pred, target: (n, c, h, w); mask broadcastable to pred.shape.
    compute_dtype=jnp.bfloat16 halves HBM traffic (f32 accumulation kept) at a
    small numerical cost; precision=lax.Precision.DEFAULT trades parity for
    MXU throughput when M is very large.
    """
    assert pred.ndim == 4 and pred.shape == target.shape
    n, c, h, w = pred.shape
    M, K = n * c, h * w
    dtype = jnp.dtype(compute_dtype) if compute_dtype is not None else pred.dtype
    bpe = dtype.itemsize

    if num_k_splits is None:
        num_k_splits = _default_num_k_splits()

    pred_f = pred.astype(dtype).reshape(M, K)
    target_f = target.astype(dtype).reshape(M, K)
    mask_f, expand = _prepare_mask(mask, pred.shape, dtype)
    R = mask_f.shape[0]

    tk, n_splits, nbk, k_pad, vmem_limit = _plan(
        M, K, num_k_splits, bpe,
        mask_rows=R, expand_cols=(R if expand is not None else 0), tk=tk)

    def pad_k(x):
        return x if x.shape[1] == k_pad else jnp.pad(
            x, ((0, 0), (0, k_pad - x.shape[1])))

    pred_f, target_f, mask_f = pad_k(pred_f), pad_k(target_f), pad_k(mask_f)

    k_map = lambda s, k: (0, s * nbk + k)
    in_specs = [pl.BlockSpec((M, tk), k_map),
                pl.BlockSpec((M, tk), k_map),
                pl.BlockSpec((R, tk), k_map)]
    inputs = [pred_f, target_f, mask_f]
    if expand is not None:
        in_specs.append(pl.BlockSpec((M, R), lambda s, k: (0, 0)))
        inputs.append(expand)

    out_spec = pl.BlockSpec((None, M, M), lambda s, k: (s, 0, 0))
    out_shape = (jax.ShapeDtypeStruct((n_splits, M, M), jnp.float32),
                 jax.ShapeDtypeStruct((n_splits, M, M), jnp.float32))

    flops = 4 * M * M * k_pad
    if expand is not None:
        flops += 2 * M * R * k_pad
    bytes_accessed = (2 * M + R) * k_pad * bpe + 2 * n_splits * M * M * 4

    p_parts, q_parts = pl.pallas_call(
        _make_gram_kernel(expand is not None, precision),
        out_shape=out_shape,
        grid_spec=pltpu.PrefetchScalarGridSpec(
            num_scalar_prefetch=0,
            grid=(n_splits, nbk),
            in_specs=in_specs,
            out_specs=(out_spec, out_spec),
        ),
        compiler_params=pltpu.CompilerParams(
            dimension_semantics=("parallel", "arbitrary"),
            vmem_limit_bytes=vmem_limit),
        cost_estimate=pl.CostEstimate(
            flops=flops, transcendentals=0, bytes_accessed=bytes_accessed),
    )(*inputs)

    # Tiny epilogue in plain JAX: combine per-split partial Grams, normalize,
    # L1-mean.  (|P - Q| is not distributive over the K split.)
    G_p = p_parts[0] if n_splits == 1 else p_parts.sum(axis=0)
    G_q = q_parts[0] if n_splits == 1 else q_parts.sum(axis=0)
    denom = float(n * c * h * w)
    scale = 1.0 / (denom * float(M) * float(M))
    return jnp.sum(jnp.abs(G_p - G_q)) * scale


def _gram_loss_ref(pred, target, mask):
    n, c, h, w = pred.shape
    denom = n * c * h * w
    hp = lax.Precision.HIGHEST

    def gram(x):
        f = x.reshape(n * c, h * w)
        return jnp.dot(f, f.T, precision=hp) / denom

    mb = jnp.broadcast_to(mask, pred.shape)
    return jnp.mean(jnp.abs(gram(pred * mb) - gram(target * mb)))


if __name__ == "__main__":
    key = jax.random.PRNGKey(0)
    k1, k2, k3, k4 = jax.random.split(key, 4)

    n, c, h, w = 2, 4, 16, 16              # M = n*c = 8, K = h*w = 256
    pred = jax.random.normal(k1, (n, c, h, w), dtype=jnp.float32)
    target = jax.random.normal(k2, (n, c, h, w), dtype=jnp.float32)

    # 1) Full-shape mask, forced small K tile -> multi-step accumulation path.
    mask_full = (jax.random.uniform(k3, (n, c, h, w)) > 0.3).astype(jnp.float32)
    loss1 = jax.block_until_ready(gram_loss(pred, target, mask_full, tk=128))
    ref1 = _gram_loss_ref(pred, target, mask_full)
    assert jnp.allclose(loss1, ref1, rtol=1e-4, atol=1e-6), (loss1, ref1)

    # 2) Compact per-sample mask, auto tiling -> no-HBM-broadcast mask path.
    mask_cmp = (jax.random.uniform(k4, (n, 1, h, w)) > 0.3).astype(jnp.float32)
    loss2 = jax.block_until_ready(gram_loss(pred, target, mask_cmp))
    ref2 = _gram_loss_ref(pred, target, mask_cmp)
    assert jnp.allclose(loss2, ref2, rtol=1e-4, atol=1e-6), (loss2, ref2)

    print("KERNEL_OK")
</pallas_src>

<mosaic_0001>
module attributes {stable_mosaic.version = 11 : i64} {
  func.func @kernel(%arg0: i32, %arg1: i32, %arg2: memref<8x128xf32, #tpu.memory_space<vmem>>, %arg3: memref<8x128xf32, #tpu.memory_space<vmem>>, %arg4: memref<8x128xf32, #tpu.memory_space<vmem>>, %arg5: memref<1x8x8xf32, #tpu.memory_space<vmem>>, %arg6: memref<1x8x8xf32, #tpu.memory_space<vmem>>) attributes {dimension_semantics = [#tpu.dimension_semantics<parallel>, #tpu.dimension_semantics<arbitrary>], iteration_bounds = array<i64: 1, 2>, scalar_prefetch = 0 : i64, scratch_operands = 0 : i64, tpu.core_type = #tpu.core_type<tc>, window_params = [{transform_indices = @transform_0, window_bounds = array<i64: 8, 128>}, {transform_indices = @transform_1, window_bounds = array<i64: 8, 128>}, {transform_indices = @transform_2, window_bounds = array<i64: 8, 128>}, {transform_indices = @transform_3, window_bounds = array<i64: 1, 8, 8>}, {transform_indices = @transform_4, window_bounds = array<i64: 1, 8, 8>}]} {
    %c0 = arith.constant 0 : index
    %c0_0 = arith.constant 0 : index
    %0 = vector.load %arg4[%c0, %c0_0] : memref<8x128xf32, #tpu.memory_space<vmem>>, vector<8x128xf32>
    %c0_1 = arith.constant 0 : index
    %c0_2 = arith.constant 0 : index
    %1 = vector.load %arg2[%c0_1, %c0_2] : memref<8x128xf32, #tpu.memory_space<vmem>>, vector<8x128xf32>
    %2 = arith.mulf %1, %0 : vector<8x128xf32>
    %c0_3 = arith.constant 0 : index
    %c0_4 = arith.constant 0 : index
    %3 = vector.load %arg3[%c0_3, %c0_4] : memref<8x128xf32, #tpu.memory_space<vmem>>, vector<8x128xf32>
    %4 = arith.mulf %3, %0 : vector<8x128xf32>
    %cst = arith.constant dense<0.000000e+00> : vector<8x8xf32>
    %5 = tpu.matmul %2, %2, %cst {dimension_numbers = #tpu.dot_dimension_numbers<[1], [1], [0], [0], [0, 0, 1, 0], [], []>, precision = #tpu.contract_precision<fp32>} : vector<8x128xf32>, vector<8x128xf32>, vector<8x8xf32> -> vector<8x8xf32>
    %cst_5 = arith.constant dense<0.000000e+00> : vector<8x8xf32>
    %6 = tpu.matmul %4, %4, %cst_5 {dimension_numbers = #tpu.dot_dimension_numbers<[1], [1], [0], [0], [0, 0, 1, 0], [], []>, precision = #tpu.contract_precision<fp32>} : vector<8x128xf32>, vector<8x128xf32>, vector<8x8xf32> -> vector<8x8xf32>
    %c0_i32 = arith.constant 0 : i32
    %7 = arith.cmpi eq, %arg1, %c0_i32 : i32
    %8 = arith.extui %7 : i1 to i32
    %c0_i32_6 = arith.constant 0 : i32
    %9 = arith.cmpi ne, %8, %c0_i32_6 : i32
    scf.if %9 {
      %c0_9 = arith.constant 0 : index
      %c0_10 = arith.constant 0 : index
      %c0_11 = arith.constant 0 : index
      %13 = vector.load %arg5[%c0_9, %c0_10, %c0_11] : memref<1x8x8xf32, #tpu.memory_space<vmem>>, vector<1x8x8xf32>
      %14 = vector.shape_cast %13 : vector<1x8x8xf32> to vector<8x8xf32>
      %15 = vector.shape_cast %5 : vector<8x8xf32> to vector<1x8x8xf32>
      tpu.vector_store %arg5[%c0_9, %c0_10, %c0_11], %15 {strides = array<i32>} : memref<1x8x8xf32, #tpu.memory_space<vmem>>, vector<1x8x8xf32>,
      %c0_12 = arith.constant 0 : index
      %c0_13 = arith.constant 0 : index
      %c0_14 = arith.constant 0 : index
      %16 = vector.load %arg6[%c0_12, %c0_13, %c0_14] : memref<1x8x8xf32, #tpu.memory_space<vmem>>, vector<1x8x8xf32>
      %17 = vector.shape_cast %16 : vector<1x8x8xf32> to vector<8x8xf32>
      %18 = vector.shape_cast %6 : vector<8x8xf32> to vector<1x8x8xf32>
      tpu.vector_store %arg6[%c0_12, %c0_13, %c0_14], %18 {strides = array<i32>} : memref<1x8x8xf32, #tpu.memory_space<vmem>>, vector<1x8x8xf32>,
    } else {
    }
    %c0_i32_7 = arith.constant 0 : i32
    %10 = arith.cmpi sgt, %arg1, %c0_i32_7 : i32
    %11 = arith.extui %10 : i1 to i32
    %c0_i32_8 = arith.constant 0 : i32
    %12 = arith.cmpi ne, %11, %c0_i32_8 : i32
    scf.if %12 {
      %c0_9 = arith.constant 0 : index
      %c0_10 = arith.constant 0 : index
      %c0_11 = arith.constant 0 : index
      %13 = vector.load %arg5[%c0_9, %c0_10, %c0_11] : memref<1x8x8xf32, #tpu.memory_space<vmem>>, vector<1x8x8xf32>
      %14 = vector.shape_cast %13 : vector<1x8x8xf32> to vector<8x8xf32>
      %15 = arith.addf %14, %5 : vector<8x8xf32>
      %c0_12 = arith.constant 0 : index
      %c0_13 = arith.constant 0 : index
      %c0_14 = arith.constant 0 : index
      %16 = vector.load %arg5[%c0_12, %c0_13, %c0_14] : memref<1x8x8xf32, #tpu.memory_space<vmem>>, vector<1x8x8xf32>
      %17 = vector.shape_cast %16 : vector<1x8x8xf32> to vector<8x8xf32>
      %18 = vector.shape_cast %15 : vector<8x8xf32> to vector<1x8x8xf32>
      tpu.vector_store %arg5[%c0_12, %c0_13, %c0_14], %18 {strides = array<i32>} : memref<1x8x8xf32, #tpu.memory_space<vmem>>, vector<1x8x8xf32>,
      %c0_15 = arith.constant 0 : index
      %c0_16 = arith.constant 0 : index
      %c0_17 = arith.constant 0 : index
      %19 = vector.load %arg6[%c0_15, %c0_16, %c0_17] : memref<1x8x8xf32, #tpu.memory_space<vmem>>, vector<1x8x8xf32>
      %20 = vector.shape_cast %19 : vector<1x8x8xf32> to vector<8x8xf32>
      %21 = arith.addf %20, %6 : vector<8x8xf32>
      %c0_18 = arith.constant 0 : index
      %c0_19 = arith.constant 0 : index
      %c0_20 = arith.constant 0 : index
      %22 = vector.load %arg6[%c0_18, %c0_19, %c0_20] : memref<1x8x8xf32, #tpu.memory_space<vmem>>, vector<1x8x8xf32>
      %23 = vector.shape_cast %22 : vector<1x8x8xf32> to vector<8x8xf32>
      %24 = vector.shape_cast %21 : vector<8x8xf32> to vector<1x8x8xf32>
      tpu.vector_store %arg6[%c0_18, %c0_19, %c0_20], %24 {strides = array<i32>} : memref<1x8x8xf32, #tpu.memory_space<vmem>>, vector<1x8x8xf32>,
    } else {
    }
    return
  }
  func.func @transform_0(%arg0: i32, %arg1: i32) -> (i32, i32) {
    %c2_i32 = arith.constant 2 : i32
    %0 = arith.muli %arg0, %c2_i32 : i32
    %1 = arith.addi %0, %arg1 : i32
    %c0_i32 = arith.constant 0 : i32
    %c0_i32_0 = arith.constant 0 : i32
    return %c0_i32, %1 : i32, i32
  }
  func.func @transform_1(%arg0: i32, %arg1: i32) -> (i32, i32) {
    %c2_i32 = arith.constant 2 : i32
    %0 = arith.muli %arg0, %c2_i32 : i32
    %1 = arith.addi %0, %arg1 : i32
    %c0_i32 = arith.constant 0 : i32
    %c0_i32_0 = arith.constant 0 : i32
    return %c0_i32, %1 : i32, i32
  }
  func.func @transform_2(%arg0: i32, %arg1: i32) -> (i32, i32) {
    %c2_i32 = arith.constant 2 : i32
    %0 = arith.muli %arg0, %c2_i32 : i32
    %1 = arith.addi %0, %arg1 : i32
    %c0_i32 = arith.constant 0 : i32
    %c0_i32_0 = arith.constant 0 : i32
    return %c0_i32, %1 : i32, i32
  }
  func.func @transform_3(%arg0: i32, %arg1: i32) -> (i32, i32, i32) {
    %c0_i32 = arith.constant 0 : i32
    %c0_i32_0 = arith.constant 0 : i32
    %c0_i32_1 = arith.constant 0 : i32
    return %arg0, %c0_i32, %c0_i32_0 : i32, i32, i32
  }
  func.func @transform_4(%arg0: i32, %arg1: i32) -> (i32, i32, i32) {
    %c0_i32 = arith.constant 0 : i32
    %c0_i32_0 = arith.constant 0 : i32
    %c0_i32_1 = arith.constant 0 : i32
    return %arg0, %c0_i32, %c0_i32_0 : i32, i32, i32
  }
}

</mosaic_0001>

<bundles_post_ra>
// kernel: tpu_custom_call.1
= control target key start
LH: loop header
LB: loop body
LE: loop exit
PB: predicated region body
PF: predicated region fallthrough
CT: control target
= control target key end

     0   :  { %s2102_s0 = inlined_call_operand.hbm [shape: f32[8,256], index: 0, kind: input, shape index: {}]   ;;  %s2103_s1 = inlined_call_operand.hbm [shape: f32[8,256], index: 1, kind: input, shape index: {}]   ;;  %s2104_s2 = inlined_call_operand.hbm [shape: f32[8,256], index: 2, kind: input, shape index: {}]   ;;  %s2105_s3 = inlined_call_operand.hbm [shape: f32[1,8,8], index: 3, kind: output, shape index: {0}]   ;;  %s2106_s4 = inlined_call_operand.hbm [shape: f32[1,8,8], index: 4, kind: output, shape index: {1}]  }
   0x1   :  { %2110 = sst [smem:[#allocation15_spill]] %s2103_s1 }
   0x2   :  { %10 = vsyncpa [#allocation3], 0 }
   0x3   :  { %12 = vsyncpa [#allocation3 + $0x1], 0 }
   0x4   :  { %13 = vsyncpa [#allocation6], 0 }
   0x5   :  { %15 = vsyncpa [#allocation6 + $0x1], 0 }
   0x6   :  { %16 = vsyncpa [#allocation4], 0 }
   0x7   :  { %17 = vsyncpa [#allocation10], 0  ;;  %s1821_s15 = smov 0   ;;  %s1823_s16 = smov 0  }
   0x8   :  { %s1825_s17 = smov 0   ;;  %s1827_s18 = smov 0  }
   0x9   :  { %s1829_s19 = smov 0   ;;  %s1831_s20 = smov 0  }
   0xa LB: > { %s1850_s21 = sadd.s32 4294967295, %s1787_s20   ;;  %s32_s22 = sadd.s32 1, %s1783_s19  ;;  %s1787_s20 = sphi %s1831_s20, %s23_s20   ;;  %s1783_s19 = sphi %s1829_s19, %s2125_s19   ;;  %s1779_s18 = sphi %s1827_s18, %s2124_s18   ;;  %s1775_s17 = sphi %s1825_s17, %s2123_s17   ;;  %s1771_s16 = sphi %s1823_s16, %s2122_s16   ;;  %s1767_s15 = sphi %s1821_s15, %s2121_s15  }
   0xb   : > { %p33_p0 = scmp.ge.s32.totalorder %s32_s22, 2  ;;  %s46_s23 = sadd.s32 1, %s1775_s17 }
   0xc   : > { %p53_p1 = scmp.ne.s32.totalorder %s1775_s17, %s1771_s16  ;;  %p54_p2 = scmp.eq.s32.totalorder %s1787_s20, 0 }
   0xd   : > { %s2127_s22 = smov (%p33_p0, %s32_s22), 0  ;;  %p59_p4 = scmp.ne.s32.totalorder %s1771_s16, %s1767_s15 }
   0xe   : > { %p55_p3 = por %p54_p2, %p53_p1  ;;  %s43_s24 = ssub.s32 %s1783_s19, %s2127_s22 }
   0xf   : > { %p60_p5 = scmp.eq.s32.totalorder %s1850_s21, 0  ;;  %p44_p6 = scmp.eq.s32.totalorder %s43_s24, 0 }
  0x10   : > { %p1526_p8 = scmp.lt.s32.totalorder %s1787_s20, 2  ;;  %s195_s27 = sand.u32 1, %s1775_s17  }
  0x11   : > { %p1863_p7 = por %p60_p5, %p59_p4  ;;  %s1873_s28 = sshll.u32 %s1783_s19, 7 }
  0x12   : > { %s1869_s26 = scalar_select %p44_p6, %s1775_s17, %s46_s23  }
  0x13   : > { %s2111_s25 = scalar_select %p1863_p7, 1, 0 }
  0x14   : > { %s1877_s29 = sshll.u32 %s195_s27, 3  ;;  %p1879_p9 = pnand %p1526_p8, %p55_p3 }
  0x15   : > { %s215_s5 = sand.u32 1, %s1787_s20   ;;  %s2113_s1 = sld [smem:[#allocation15_spill]] }
  0x16   : > { %s2112_s30 = scalar_select %p1879_p9, 1, 0 }
  0x17   : > { %s219_s9 = scalar_lea.vmem [#allocation5], %s1877_s29  ;;  %s1894_s11 = scalar_lea.sflag [#allocation6], %s215_s5 }
  0x18   : > { %s228_s10 = sshll.u32 %s219_s9, 4  ;;  %p1900_p12 = pneg %p1879_p9  ;;  %s1891_s10 = int_to_ptr.vmem [resolvable:$true] %s228_s10 }
  0x1b   : > { %s1888_s8 = scalar_lea.hbm %s2113_s1, %s1873_s28  ;;  %s1588_s23 = scalar_lea.hbm %s2113_s1, 256 }
  0x1c   : > { %s1583_s12 = scalar_lea.hbm %s1888_s8, 128  ;;  %p1589_p1 = scmp.lt.u32.totalorder %s1888_s8, %s2113_s1 }
  0x1d   : > { %p1584_p11 = scmp.ne.s32.totalorder %s1888_s8, %s1583_s12  ;;  %p1590_p2 = scmp.lt.u32.totalorder %s1588_s23, %s1583_s12 }
  0x1e   : > { %p1592_p4 = scmp.lt.u32.totalorder %s1583_s12, %s1888_s8 }
  0x1f   : > { %p1586_p13 = pnand %p1900_p12, %p1584_p11  ;;  %p1591_p3 = por %p1590_p2, %p1589_p1 }
  0x21   : > { %p1587_p0 = pneg %p1586_p13  ;;  %p1593_p5 = por %p1592_p4, %p1591_p3 }
  0x23   : > { %p1594_p6 = pnand %p1593_p5, %p1587_p0 }
  0x25   : > { %1597 = shalt.err (!%p1594_p6)
}
  0x26   : > { %s1598_s5 = scalar_lea.vmem %s1891_s10, 128  ;;  %s1789_s7 = smov [#allocation5]  }
  0x27   : > { %p1599_p8 = scmp.ne.s32.totalorder %s1891_s10, %s1598_s5  ;;  %s1603_s9 = sshll.u32 %s1789_s7, 4  ;;  %s1604_s9 = int_to_ptr.vmem [resolvable:$false] %s1603_s9 }
  0x28   : > { %s1605_s14 = scalar_lea.vmem %s1604_s9, 256  ;;  %p1606_p10 = scmp.lt.s32.totalorder %s1891_s10, %s1604_s9 }
  0x29   : > { %p1601_p11 = pnand %p1599_p8, %p1900_p12  ;;  %p1607_p7 = scmp.lt.s32.totalorder %s1605_s14, %s1598_s5 }
  0x2b   : > { %p1602_p13 = pneg %p1601_p11  ;;  %p1608_p1 = por %p1607_p7, %p1606_p10 }
  0x2d   : > { %p1609_p2 = pnand %p1608_p1, %p1602_p13 }
  0x2f   : > { %1612 = shalt.err (!%p1609_p2)
}
  0x30   : > { %1522 = dma.hbm_to_vmem [thread:$0]  (!%p1879_p9), %s1888_s8, 128, %s1891_s10, %s1894_s11  }
  0x31   : > { %p253_p0 = scmp.lt.s32.totalorder %s1787_s20, 3  ;;  %p2115_p3 = scmp.ge.s32.totalorder %s1787_s20, 1 }
  0x32   : > { %s1935_s24 = scalar_lea.hbm %s2102_s0, %s1873_s28  ;;  %s199_s6 = scalar_lea.vmem [#allocation2], %s1877_s29 }
  0x33   : > { %p1927_p4 = pnand %p2115_p3, %p253_p0  ;;  %s208_s5 = sshll.u32 %s199_s6, 4  ;;  %s209_s5 = int_to_ptr.vmem [resolvable:$true] %s208_s5 }
  0x34   : > { %s196_s8 = scalar_lea.sflag [#allocation3], %s195_s27  ;;  %s1613_s10 = scalar_lea.hbm %s1935_s24, 128 }
  0x35   : > { %s2116_s12 = scalar_select %p1927_p4, 1, 0 }
  0x36   : > { %p1614_p7 = scmp.ne.s32.totalorder %s1935_s24, %s1613_s10  ;;  %s1618_s14 = scalar_lea.hbm %s2102_s0, 256 }
  0x37   : > { %p1619_p6 = scmp.lt.u32.totalorder %s1935_s24, %s2102_s0  ;;  %p1620_p8 = scmp.lt.u32.totalorder %s1618_s14, %s1613_s10 }
  0x38   : > { %p1616_p10 = pnand %p1614_p7, %p1900_p12  ;;  %p1622_p13 = scmp.lt.u32.totalorder %s1613_s10, %s1935_s24 }
  0x39   : > { %p1621_p11 = por %p1620_p8, %p1619_p6 }
  0x3a   : > { %p1617_p5 = pneg %p1616_p10 }
  0x3b   : > { %p1623_p1 = por %p1622_p13, %p1621_p11 }
  0x3d   : > { %p1624_p2 = pnand %p1623_p1, %p1617_p5 }
  0x3f   : > { %1627 = shalt.err (!%p1624_p2)
}
  0x40   : > { %s1628_s27 = scalar_lea.vmem %s209_s5, 128  ;;  %s1790_s6 = smov [#allocation2]  }
  0x41   : > { %p1629_p0 = scmp.ne.s32.totalorder %s209_s5, %s1628_s27  ;;  %s1633_s1 = sshll.u32 %s1790_s6, 4  ;;  %s1634_s1 = int_to_ptr.vmem [resolvable:$false] %s1633_s1 }
  0x42   : > { %s1635_s7 = scalar_lea.vmem %s1634_s1, 256  ;;  %p1636_p10 = scmp.lt.s32.totalorder %s209_s5, %s1634_s1 }
  0x43   : > { %p1631_p3 = pnand %p1629_p0, %p1900_p12  ;;  %p1637_p4 = scmp.lt.s32.totalorder %s1635_s7, %s1628_s27 }
  0x45   : > { %p1632_p7 = pneg %p1631_p3  ;;  %p1638_p9 = por %p1637_p4, %p1636_p10 }
  0x47   : > { %p1639_p6 = pnand %p1638_p9, %p1632_p7 }
  0x49   : > { %1642 = shalt.err (!%p1639_p6)
}
  0x4a   : > { %p2117_p8 = scmp.ne.s32.totalorder %s2112_s30, 0  ;;  %s1961_s14 = scalar_lea.hbm %s2104_s2, %s1873_s28 }
  0x4b   : > { %s239_s1 = scalar_lea.vmem [#allocation7], %s1877_s29  ;;  %s1643_s23 = scalar_lea.hbm %s1961_s14, 128 }
  0x4c   : > { %1519 = dma.hbm_to_vmem [thread:$0]  (!%p2117_p8), %s1935_s24, 128, %s209_s5, %s196_s8  }
  0x4d   : > { %s248_s15 = sshll.u32 %s239_s1, 4  ;;  %p1644_p9 = scmp.ne.s32.totalorder %s1961_s14, %s1643_s23  ;;  %s249_s15 = int_to_ptr.vmem [resolvable:$true] %s248_s15 }
  0x4e   : > { %s1648_s24 = scalar_lea.hbm %s2104_s2, 256  ;;  %p1649_p11 = scmp.lt.u32.totalorder %s1961_s14, %s2104_s2 }
  0x4f   : > { %p1646_p4 = pnand %p1644_p9, %p1900_p12  ;;  %p1650_p13 = scmp.lt.u32.totalorder %s1648_s24, %s1643_s23 }
  0x50   : > { %p1652_p2 = scmp.lt.u32.totalorder %s1643_s23, %s1961_s14 }
  0x51   : > { %p1647_p5 = pneg %p1646_p4  ;;  %p1651_p1 = por %p1650_p13, %p1649_p11 }
  0x53   : > { %p1653_p0 = por %p1652_p2, %p1651_p1 }
  0x55   : > { %p1654_p3 = pnand %p1653_p0, %p1647_p5 }
  0x57   : > { %1657 = shalt.err (!%p1654_p3)
}
  0x58   : > { %s1658_s28 = scalar_lea.vmem %s249_s15, 128  ;;  %s1791_s29 = smov [#allocation7]  }
  0x59   : > { %p1659_p7 = scmp.ne.s32.totalorder %s249_s15, %s1658_s28  ;;  %s1663_s7 = sshll.u32 %s1791_s29, 4  ;;  %s1664_s7 = int_to_ptr.vmem [resolvable:$false] %s1663_s7 }
  0x5a   : > { %s1665_s10 = scalar_lea.vmem %s1664_s7, 256  ;;  %p1666_p9 = scmp.lt.s32.totalorder %s249_s15, %s1664_s7 }
  0x5b   : > { %p1661_p10 = pnand %p1659_p7, %p1900_p12  ;;  %p1667_p4 = scmp.lt.s32.totalorder %s1665_s10, %s1658_s28 }
  0x5d   : > { %p1662_p6 = pneg %p1661_p10  ;;  %p1668_p8 = por %p1667_p4, %p1666_p9 }
  0x5f   : > { %p1669_p11 = pnand %p1668_p8, %p1662_p6 }
  0x61   : > { %1672 = shalt.err (!%p1669_p11)
}
  0x62   : > { %p2118_p13 = scmp.ne.s32.totalorder %s2112_s30, 0  ;;  %p2119_p5 = scmp.ne.s32.totalorder %s2116_s12, 0 }
  0x63   : > { %s259_s13 = sand.u32 (!%p2119_p5), 1, %s1771_s16   ;;  %p2120_p12 = scmp.ne.s32.totalorder (!%p2119_p5), %s2111_s25, 0 }
  0x64   : > { %1525 = dma.hbm_to_vmem [thread:$0]  (!%p2118_p13), %s1961_s14, 128, %s249_s15, %s1894_s11  }
  0x65   : > { %257 = sbr.rel (%p2119_p5) target bundleno = 437 (0x1b5), region = 32  ;;  %s1387_s9 = sshll.u32 (!%p2119_p5), %s259_s13, 3 }
  0x66   : > { %s260_s1 = scalar_lea.sflag (!%p2119_p5), [#allocation3], %s259_s13  ;;  %s263_s23 = scalar_lea.vmem (!%p2119_p5), [#allocation2], %s1387_s9 }
  0x6c   : > { %1750 = dma.done.wait (%p2120_p12), %s260_s1, 128  }
  0x6d   : > { %1752 = vsyncadd (%p2120_p12), %s260_s1, 4294967168  ;;  %s268_s30 = sand.u32 1, %s1850_s21   ;;  %s272_s6 = scalar_lea.vmem [#allocation5], %s1387_s9 }
  0x6e   : > { %s269_s27 = scalar_lea.sflag [#allocation6], %s268_s30 }
  0x6f   : > { %1754 = dma.done.wait (%p2120_p12), %s269_s27, 256  }
  0x70   : > { %1756 = vsyncadd (%p2120_p12), %s269_s27, 4294967040  ;;  %v1792_v0 = vmov 0.0   ;;  %vm1793_vm0 = vmmov 0   ;;  %s281_s11 = scalar_lea.vmem [#allocation7], %s1387_s9  ;;  %v318_v2 = vld [vmem:[%s263_s23] sm:$0xff]  ;;  %v320_v3 = vld [vmem:[%s272_s6] sm:$0xff] }
  0x71   : > { %1422 = vmatprep.subr.mxu0 %v1792_v0  ;;  %1452 = vmatprep.subr.mxu1 %v1792_v0  ;;  %v317_v1 = vld [vmem:[%s281_s11] sm:$0xff]  ;;  %p1390_p8 = scmp.ne.s32.totalorder %s1779_s18, 0 }
  0x72   : > { %1424 = vmatprep.mubr.msk.f32.mxu0 %vm1793_vm0, %v1792_v0  ;;  %1454 = vmatprep.mubr.msk.f32.mxu1 %vm1793_vm0, %v1792_v0  ;;  %v319_v4 = vmul.f32 %v318_v2, %v317_v1  ;;  %v321_v5 = vmul.f32 %v320_v3, %v317_v1  ;;  %vm1218_vm1 = vcmask (!%p1390_p8), 64512  }
  0x74   : > { %v323_v6 = vand.u32 4294901760, %v319_v4  ;;  %v769_v7 = vand.u32 4294901760, %v321_v5 }
  0x76   : > { %1423 = vmatpush3.xpose.msra.mxu0 %v323_v6  ;;  %1453 = vmatpush3.xpose.msra.mxu1 %v769_v7  ;;  %v389_v8 = vsub.f32 %v319_v4, %v323_v6  ;;  %v835_v9 = vsub.f32 %v321_v5, %v769_v7 }
  0x77   : > { %1427 = vmatprep.subr.mxu0 %v1792_v0  ;;  %1457 = vmatprep.subr.mxu1 %v1792_v0 }
  0x78   : > { %v390_v10 = vand.u32 4294901760, %v389_v8  ;;  %v836_v11 = vand.u32 4294901760, %v835_v9 }
  0x7a   : > { %v391_v12 = vsub.f32 %v389_v8, %v390_v10  ;;  %v837_v13 = vsub.f32 %v835_v9, %v836_v11 }
  0x7c   : > { %v392_v14 = vand.u32 4294901760, %v391_v12  ;;  %v838_v15 = vand.u32 4294901760, %v837_v13 }
  0x7e   : > { %1425 = vmatmul.mubr.f32.vlgmr.msra.gmra.mrb[0].mxu0 %v392_v14  ;;  %1455 = vmatmul.mubr.f32.vlgmr.msra.gmra.mrb[0].mxu1 %v838_v15 }
  0x7f   : > { %1428 = vmatpush3.xpose.msra.mxu0 %v392_v14  ;;  %1458 = vmatpush3.xpose.msra.mxu1 %v838_v15 }
  0x80   : > { %1429 = vmatprep.mubr.msk.f32.mxu0 %vm1793_vm0, %v1792_v0  ;;  %1432 = vmatprep.subr.mxu0 %v1792_v0 }
  0x81   : > { %1459 = vmatprep.mubr.msk.f32.mxu1 %vm1793_vm0, %v1792_v0  ;;  %1462 = vmatprep.subr.mxu1 %v1792_v0 }
  0x86   : > { %1430 = vmatmul.mubr.f32.vlgmr.msra.gmra.mrb[0].mxu0 %v323_v6  ;;  %1460 = vmatmul.mubr.f32.vlgmr.msra.gmra.mrb[0].mxu1 %v769_v7 }
  0x87   : > { %1433 = vmatpush3.xpose.msra.mxu0 %v389_v8  ;;  %1463 = vmatpush3.xpose.msra.mxu1 %v835_v9 }
  0x88   : > { %1434 = vmatprep.mubr.msk.f32.mxu0 %vm1793_vm0, %v1792_v0  ;;  %1437 = vmatprep.subr.mxu0 %v1792_v0 }
  0x89   : > { %1464 = vmatprep.mubr.msk.f32.mxu1 %vm1793_vm0, %v1792_v0  ;;  %1467 = vmatprep.subr.mxu1 %v1792_v0 }
  0x8e   : > { %1435 = vmatmul.mubr.f32.vlgmr.msra.gmra.mrb[0].mxu0 %v389_v8  ;;  %1465 = vmatmul.mubr.f32.vlgmr.msra.gmra.mrb[0].mxu1 %v835_v9 }
  0x8f   : > { %1438 = vmatpush3.xpose.msra.mxu0 %v323_v6  ;;  %1468 = vmatpush3.xpose.msra.mxu1 %v769_v7 }
  0x90   : > { %1439 = vmatprep.mubr.msk.f32.mxu0 %vm1793_vm0, %v1792_v0  ;;  %1442 = vmatprep.subr.mxu0 %v1792_v0 }
  0x91   : > { %1469 = vmatprep.mubr.msk.f32.mxu1 %vm1793_vm0, %v1792_v0  ;;  %1472 = vmatprep.subr.mxu1 %v1792_v0 }
  0x96   : > { %1440 = vmatmul.mubr.f32.vlgmr.msra.gmra.mrb[0].mxu0 %v390_v10  ;;  %1470 = vmatmul.mubr.f32.vlgmr.msra.gmra.mrb[0].mxu1 %v836_v11 }
  0x97   : > { %1443 = vmatpush3.xpose.msra.mxu0 %v390_v10  ;;  %1473 = vmatpush3.xpose.msra.mxu1 %v836_v11 }
  0x98   : > { %1444 = vmatprep.mubr.msk.f32.mxu0 %vm1793_vm0, %v1792_v0  ;;  %1447 = vmatprep.subr.mxu0 %v1792_v0 }
  0x99   : > { %1474 = vmatprep.mubr.msk.f32.mxu1 %vm1793_vm0, %v1792_v0  ;;  %1477 = vmatprep.subr.mxu1 %v1792_v0 }
  0x9e   : > { %1445 = vmatmul.mubr.f32.vlgmr.msra.gmra.mrb[0].mxu0 %v323_v6  ;;  %1475 = vmatmul.mubr.f32.vlgmr.msra.gmra.mrb[0].mxu1 %v769_v7 }
  0x9f   : > { %1448 = vmatpush3.xpose.msra.mxu0 %v323_v6  ;;  %1478 = vmatpush3.xpose.msra.mxu1 %v769_v7 }
  0xa0   : > { %1449 = vmatprep.mubr.msk.f32.mxu0 %vm1793_vm0, %v1792_v0  ;;  %1479 = vmatprep.mubr.msk.f32.mxu1 %vm1793_vm0, %v1792_v0 }
  0xa6   : > { %1450 = vmatmul.mubr.f32.vlgmr.msra.gmra.mrb[0].mxu0 %v323_v6  ;;  %1480 = vmatmul.mubr.f32.vlgmr.msra.gmra.mrb[0].mxu1 %v769_v7 }
 0x174   : > { %1217 = sbr.rel (%p1390_p8) target bundleno = 379 (0x17b), region = 48 }
 0x179   : > { %v764_v16 = vpop.f32.mrb[0].mxu0  ;;  %v1210_v17 = vpop.f32.mrb[0].mxu1 }
 0x17a   : > { %v1451_v18 = vpop.f32.mrb[1].mxu0  ;;  %v1481_v19 = vpop.f32.mrb[1].mxu1  ;;  %1219 = vst.msk [vmem:[#allocation8] sm:$0xff] (!%p1390_p8), %vm1218_vm1, %v764_v16  ;;  %1220 = vst.msk [vmem:[#allocation9] sm:$0xff] (!%p1390_p8), %vm1218_vm1, %v1210_v17 }
 0x17b PF: > { %p1391_p1 = scmp.le.s32.totalorder %s1779_s18, 0 }
 0x17c   : > { %vm1227_vm2 = vcmask (!%p1391_p1), 64512  }
 0x17d   : > { %1224 = sbr.rel (%p1391_p1) target bundleno = 389 (0x185), region = 52 }
 0x181   : > { %v1225_v20 = vld [vmem:[#allocation8] sm:$0xff] (!%p1391_p1)  ;;  %v1229_v21 = vld [vmem:[#allocation9] sm:$0xff] (!%p1391_p1) }
 0x182   : > { %v1226_v22 = vadd.f32 (!%p1391_p1), %v1225_v20, %v764_v16  ;;  %v1230_v23 = vadd.f32 (!%p1391_p1), %v1229_v21, %v1210_v17 }
 0x184   : > { %1228 = vst.msk [vmem:[#allocation8] sm:$0xff] %vm1227_vm2, %v1226_v22  ;;  %1231 = vst.msk [vmem:[#allocation9] sm:$0xff] %vm1227_vm2, %v1230_v23 }
 0x185 PF: > { %p1527_p2 = scmp.eq.s32.totalorder %s1850_s21, 1  ;;  %s1794_s25 = smov [#allocation8]  }
 0x186   : > { %s1241_s12 = sshll.u32 %s1794_s25, 4  ;;  %s1795_s14 = smov [#allocation9]   ;;  %s1242_s12 = int_to_ptr.vmem [resolvable:$true] %s1241_s12 }
 0x187   : > { %s1254_s15 = sshll.u32 %s1795_s14, 4  ;;  %s1673_s18 = scalar_lea.vmem %s1242_s12, 128  ;;  %s2033_s15 = int_to_ptr.vmem [resolvable:$true] %s1254_s15 }
 0x188   : > { %p1674_p0 = scmp.ne.s32.totalorder %s1242_s12, %s1673_s18  ;;  %p1680_p10 = scmp.lt.s32.totalorder %s1242_s12, %s1242_s12 }
 0x189   : > { %p1681_p6 = scmp.lt.s32.totalorder %s1673_s18, %s1673_s18 }
 0x18a   : > { %p1675_p3 = pnand %p1674_p0, %p1527_p2 }
 0x18b   : > { %p1682_p9 = por %p1681_p6, %p1680_p10 }
 0x18c   : > { %p1676_p7 = pneg %p1675_p3 }
 0x18e   : > { %p1683_p4 = pnand %p1682_p9, %p1676_p7 }
 0x190   : > { %1686 = shalt.err (!%p1683_p4)
}
 0x191   : > { %s1687_s8 = scalar_lea.hbm %s2105_s3, 128 }
 0x192   : > { %p1688_p11 = scmp.ne.s32.totalorder %s2105_s3, %s1687_s8  ;;  %p1693_p12 = scmp.lt.u32.totalorder %s1687_s8, %s2105_s3 }
 0x194   : > { %p1689_p13 = pnand %p1688_p11, %p1527_p2 }
 0x196   : > { %p1690_p5 = pneg %p1689_p13 }
 0x198   : > { %p1695_p8 = pnand %p1693_p12, %p1690_p5 }
 0x19a   : > { %1698 = shalt.err (!%p1695_p8)
}
 0x19b   : > { %1509 = dma.vmem_to_hbm [thread:$0]  (%p1527_p2), %s1242_s12, 128, %s2105_s3, [#allocation4]  }
 0x19c   : > { %s1699_s1 = scalar_lea.vmem %s2033_s15, 128  ;;  %p1706_p7 = scmp.lt.s32.totalorder %s2033_s15, %s2033_s15 }
 0x19d   : > { %p1700_p1 = scmp.ne.s32.totalorder %s2033_s15, %s1699_s1  ;;  %p1707_p10 = scmp.lt.s32.totalorder %s1699_s1, %s1699_s1 }
 0x19f   : > { %p1701_p0 = pnand %p1700_p1, %p1527_p2  ;;  %p1708_p6 = por %p1707_p10, %p1706_p7 }
 0x1a1   : > { %p1702_p3 = pneg %p1701_p0 }
 0x1a3   : > { %p1709_p9 = pnand %p1708_p6, %p1702_p3 }
 0x1a5   : > { %1712 = shalt.err (!%p1709_p9)
}
 0x1a6   : > { %s1713_s27 = scalar_lea.hbm %s2106_s4, 128 }
 0x1a7   : > { %p1714_p4 = scmp.ne.s32.totalorder %s2106_s4, %s1713_s27  ;;  %p1719_p5 = scmp.lt.u32.totalorder %s1713_s27, %s2106_s4 }
 0x1a9   : > { %p1715_p11 = pnand %p1714_p4, %p1527_p2 }
 0x1ab   : > { %p1716_p13 = pneg %p1715_p11 }
 0x1ad   : > { %p1721_p12 = pnand %p1719_p5, %p1716_p13 }
 0x1af   : > { %1724 = shalt.err (!%p1721_p12)
}
 0x1b0   : > { %1511 = dma.vmem_to_hbm [thread:$0]  (%p1527_p2), %s2033_s15, 128, %s2106_s4, [#allocation10]  }
 0x1b1   : > { %1758 = dma.done.wait (%p1527_p2), [#allocation4], 128  }
 0x1b2   : > { %1760 = vsyncadd (%p1527_p2), [#allocation4], 4294967168 }
 0x1b3   : > { %1762 = dma.done.wait (%p1527_p2), [#allocation10], 128  }
 0x1b4   : > { %1764 = vsyncadd (%p1527_p2), [#allocation10], 4294967168 }
 0x1b5 PF: > { %s23_s20 = sadd.s32 1, %s1787_s20   ;;  %s2121_s15 = smov %s1771_s16 }
 0x1b6   : > { %p20_p8 = scmp.ge.s32.totalorder %s23_s20, 4   ;;  %s2122_s16 = smov %s1775_s17 }
 0x1b7   : > { %s2123_s17 = smov %s1869_s26  ;;  %s2124_s18 = smov %s1783_s19 }
 0x1b8   : > { %s2125_s19 = smov %s2127_s22  ;;  %22 = sbr.rel (!%p20_p8) target bundleno = 10 (0xa), region = 111 }
 0x1bf   :  { %1271 = vsyncpa [#allocation3], 1 }
 0x1c0   :  { %1273 = vsyncpa [#allocation3 + $0x1], 1 }
 0x1c1   :  { %1274 = vsyncpa [#allocation6], 1 }
 0x1c2   :  { %1276 = vsyncpa [#allocation6 + $0x1], 1 }
 0x1c3   :  { %1277 = vsyncpa [#allocation4], 1 }
 0x1c4   :  { %1279 = vsyncpa [#allocation4 + $0x1], 1 }
 0x1c5   :  { %1280 = vsyncpa [#allocation10], 1 }

</bundles_post_ra>
